<compile_context>
chip_gen: v5e
topology: v5e:2x2
jax: 0.10.0
libtpu: 0.0.40
codegen_flags: <defaults>
</compile_context>

<pallas_src>
import functools

import jax
import jax.numpy as jnp
from jax import lax
from jax.experimental import pallas as pl
from jax.experimental.pallas import tpu as pltpu


def _bce_dice_partials_kernel(x_ref, t_ref,
                              bce_ref, inter_ref, p2_ref, t2_ref,
                              *, w0, w1, total_rows, rc, sub, mask_rows):
    """Accumulates lane-dense (G, 128) partial sums for one (group, chunk) step."""
    k = pl.program_id(1)

    @pl.when(k == 0)
    def _():
        bce_ref[...] = jnp.zeros_like(bce_ref)
        inter_ref[...] = jnp.zeros_like(inter_ref)
        p2_ref[...] = jnp.zeros_like(p2_ref)
        t2_ref[...] = jnp.zeros_like(t2_ref)

    def partials(x_raw, t_raw, row_base):
        x = x_raw.astype(jnp.float32)
        t = t_raw.astype(jnp.float32)

        # Single exp per element, reused by BCE and dice (no tanh).
        e = jnp.exp(-jnp.abs(x))
        sp_neg = jnp.maximum(-x, 0.0) + jnp.log1p(e)        # softplus(-x)

        # BCEWithLogitsLoss(pos_weight=w1): (1-t)*x + (1+(w1-1)*t)*softplus(-x)
        bce = (x - t * x) + (1.0 + (w1 - 1.0) * t) * sp_neg

        # 2*sigmoid(x) - 1 = sign(x) * (1-e)/(1+e).  Approx EUP reciprocal +
        # one Newton step (2 VPU ops) restores ~f32 accuracy.
        d = 1.0 + e
        r = pl.reciprocal(d, approx=True)
        r = r * (2.0 - d * r)
        s = jnp.where(x >= 0.0, 1.0, -1.0) * (1.0 - e) * r

        u = 2.0 * t - 1.0
        w = t * (w1 - w0) + w0
        w2 = w * w

        if mask_rows:
            # Ragged tail of the row-chunk axis: zero out padded rows.  Zero-
            # filled padding is NOT enough (BCE(0,0)=log2, dice gets w0^2).
            rows = x.shape[1]
            iota = lax.broadcasted_iota(jnp.int32, (1, rows, 128), 1)
            m = ((row_base + iota) < total_rows).astype(jnp.float32)
            bce = bce * m
            w2 = w2 * m

        # Reduce only the row axis here; the final 128-lane reduce runs once
        # per image in the JAX epilogue.
        return (jnp.sum(bce, axis=1),
                jnp.sum(w2 * (s * u), axis=1),
                jnp.sum(w2 * (s * s), axis=1),
                jnp.sum(w2 * (u * u), axis=1))

    n_sub = rc // sub
    if n_sub == 1:
        p = partials(x_ref[...], t_ref[...], k * rc)
    else:
        # Inner sub-chunk loop bounds the f32 temporaries while the DMA block
        # stays large (decouples HBM block size from VMEM temp pressure).
        g = bce_ref.shape[0]
        init = tuple(jnp.zeros((g, 128), jnp.float32) for _ in range(4))

        def body(i, carry):
            r0 = pl.multiple_of(i * sub, sub)
            q = partials(x_ref[:, pl.ds(r0, sub), :],
                         t_ref[:, pl.ds(r0, sub), :],
                         k * rc + r0)
            return tuple(c + v for c, v in zip(carry, q))

        p = lax.fori_loop(0, n_sub, body, init, unroll=(n_sub <= 8))

    bce_ref[...] += p[0]
    inter_ref[...] += p[1]
    p2_ref[...] += p[2]
    t2_ref[...] += p[3]


_SUB_ROWS = 1024        # rows per inner sub-chunk (f32 temps <= ~512 KiB @ G=1)
_TEMP_ROWS_CAP = 4096   # max G*R rows in the small-image path (~2 MiB f32 temps)


def multi_class_soft_bce_dice_loss(logits, targets, weight=(0.2, 0.8)):
    """JAX/Pallas equivalent of MultiClassesSoftBCEDiceLoss.forward."""
    B, C, H, W = logits.shape
    assert targets.shape == logits.shape
    N = H * W
    # TODO(synk): support H*W not divisible by 128 (needs lane-dim masking too).
    assert N % 128 == 0, "H*W must be a multiple of 128 for this kernel"
    R = N // 128
    BC = B * C

    # Metadata-only reshape; the f32 cast happens inside the kernel so narrow
    # caller dtypes (bf16 logits, int8/bf16 masks) stream fewer HBM bytes.
    x = logits.reshape(BC, R, 128)
    t = targets.reshape(BC, R, 128)

    itemsize = max(jnp.dtype(x.dtype).itemsize, jnp.dtype(t.dtype).itemsize)
    # ~4 MiB cap per input block (85-86% of HBM roofline per measurements).
    rows_budget = max(8, (4 * 1024 * 1024) // (128 * itemsize))

    if R <= _TEMP_ROWS_CAP:
        # Small images: pack G whole images per block; temps bounded via G*R.
        Rc = R
        sub = R
        G = max(1, min(BC, _TEMP_ROWS_CAP // R, rows_budget // R))
        if BC >= 2:
            G = min(G, max(1, BC // 2))   # keep >= 2 groups so v7x's 2 TCs both work
        mask_rows = False
    else:
        # Large images: one image per block, big row chunks (multiple of the
        # inner sub-chunk), ragged tail masked inside the kernel.
        G = 1
        sub = _SUB_ROWS
        Rc = sub * max(1, min(rows_budget, R) // sub)
        mask_rows = (R % Rc != 0)

    n_groups = pl.cdiv(BC, G)
    n_chunks = pl.cdiv(R, Rc)

    w0, w1 = float(weight[0]), float(weight[1])
    kernel = functools.partial(_bce_dice_partials_kernel,
                               w0=w0, w1=w1, total_rows=R,
                               rc=Rc, sub=sub, mask_rows=mask_rows)

    part_shape = jax.ShapeDtypeStruct((n_groups, G, 128), jnp.float32)
    out_block = pl.BlockSpec((None, G, 128), lambda g, k: (g, 0, 0))
    in_block = pl.BlockSpec((G, Rc, 128), lambda g, k: (g, k, 0))

    bce_p, inter_p, p2_p, t2_p = pl.pallas_call(
        kernel,
        out_shape=(part_shape,) * 4,
        grid_spec=pltpu.PrefetchScalarGridSpec(
            num_scalar_prefetch=0,
            grid=(n_groups, n_chunks),
            in_specs=[in_block, in_block],
            out_specs=[out_block] * 4,
        ),
        compiler_params=pltpu.CompilerParams(
            dimension_semantics=("parallel", "arbitrary"),
            vmem_limit_bytes=48 * 1024 * 1024),
    )(x, t)

    # Tiny epilogue in plain JAX: final 128-lane reduce, per-image dice, means.
    def _img_sum(p):
        return p.reshape(n_groups * G, 128)[:BC].sum(axis=-1)

    bce_img = _img_sum(bce_p)                    # per-image BCE sums
    inter = _img_sum(inter_p)
    union = _img_sum(p2_p) + _img_sum(t2_p)
    dice_img = 1.0 - 2.0 * inter / union         # no smoothing (matches module)

    # total = (1/C) * sum_c [ 0.7 * mean_{b,hw} bce + 0.3 * mean_b dice ]
    bce_scale = 0.7 / (C * B * N)
    dice_scale = 0.3 / (C * B)
    return bce_scale * bce_img.sum() + dice_scale * dice_img.sum()


def reference_loss(logits, targets, weight=(0.2, 0.8)):
    """Pure-JAX reference mirroring the PyTorch module exactly."""
    B, C, H, W = logits.shape
    w0, w1 = float(weight[0]), float(weight[1])
    total = 0.0
    for c in range(C):
        x = logits[:, c].reshape(B, -1).astype(jnp.float32)
        t = targets[:, c].reshape(B, -1).astype(jnp.float32)
        sp_neg = jnp.maximum(-x, 0.0) + jnp.log1p(jnp.exp(-jnp.abs(x)))
        bce = jnp.mean((1.0 - t) * x + (w1 * t + (1.0 - t)) * sp_neg)
        prob = jax.nn.sigmoid(x)
        w = t * (w1 - w0) + w0
        p_ = w * (2.0 * prob - 1.0)
        t_ = w * (2.0 * t - 1.0)
        inter = jnp.sum(p_ * t_, axis=-1)
        union = jnp.sum(p_ * p_, axis=-1) + jnp.sum(t_ * t_, axis=-1)
        dice = jnp.mean(1.0 - 2.0 * inter / union)
        total = total + 0.7 * bce + 0.3 * dice
    return total / C


if __name__ == "__main__":
    key = jax.random.PRNGKey(0)
    k1, k2 = jax.random.split(key)

    B, C, H, W = 2, 4, 16, 16   # classes_num = 4
    logits = jax.random.normal(k1, (B, C, H, W), dtype=jnp.float32)
    targets = jax.random.bernoulli(k2, 0.3, (B, C, H, W)).astype(jnp.float32)

    loss = multi_class_soft_bce_dice_loss(logits, targets, weight=(0.2, 0.8))
    loss = jax.block_until_ready(loss)

    ref = jax.block_until_ready(reference_loss(logits, targets, weight=(0.2, 0.8)))
    assert abs(float(loss) - float(ref)) < 2e-4, (float(loss), float(ref))

    print("KERNEL_OK")
</pallas_src>

<mosaic_0001>
module attributes {stable_mosaic.version = 11 : i64} {
  func.func @_bce_dice_partials_kernel(%arg0: i32, %arg1: i32, %arg2: memref<4x2x128xf32, #tpu.memory_space<vmem>>, %arg3: memref<4x2x128xf32, #tpu.memory_space<vmem>>, %arg4: memref<1x4x128xf32, #tpu.memory_space<vmem>>, %arg5: memref<1x4x128xf32, #tpu.memory_space<vmem>>, %arg6: memref<1x4x128xf32, #tpu.memory_space<vmem>>, %arg7: memref<1x4x128xf32, #tpu.memory_space<vmem>>) attributes {dimension_semantics = [#tpu.dimension_semantics<parallel>, #tpu.dimension_semantics<arbitrary>], iteration_bounds = array<i64: 2, 1>, scalar_prefetch = 0 : i64, scratch_operands = 0 : i64, tpu.core_type = #tpu.core_type<tc>, window_params = [{transform_indices = @transform_0, window_bounds = array<i64: 4, 2, 128>}, {transform_indices = @transform_1, window_bounds = array<i64: 4, 2, 128>}, {transform_indices = @transform_2, window_bounds = array<i64: 1, 4, 128>}, {transform_indices = @transform_3, window_bounds = array<i64: 1, 4, 128>}, {transform_indices = @transform_4, window_bounds = array<i64: 1, 4, 128>}, {transform_indices = @transform_5, window_bounds = array<i64: 1, 4, 128>}]} {
    %c0_i32 = arith.constant 0 : i32
    %0 = arith.cmpi eq, %arg1, %c0_i32 : i32
    %1 = arith.extui %0 : i1 to i32
    %c0_i32_0 = arith.constant 0 : i32
    %2 = arith.cmpi ne, %1, %c0_i32_0 : i32
    scf.if %2 {
      %cst_48 = arith.constant 0.000000e+00 : f32
      %82 = vector.broadcast %cst_48 : f32 to vector<4x128xf32>
      %c0_49 = arith.constant 0 : index
      %c0_50 = arith.constant 0 : index
      %c0_51 = arith.constant 0 : index
      %83 = vector.load %arg4[%c0_49, %c0_50, %c0_51] : memref<1x4x128xf32, #tpu.memory_space<vmem>>, vector<1x4x128xf32>
      %84 = vector.shape_cast %83 : vector<1x4x128xf32> to vector<4x128xf32>
      %85 = vector.shape_cast %82 : vector<4x128xf32> to vector<1x4x128xf32>
      tpu.vector_store %arg4[%c0_49, %c0_50, %c0_51], %85 {strides = array<i32>} : memref<1x4x128xf32, #tpu.memory_space<vmem>>, vector<1x4x128xf32>,
      %cst_52 = arith.constant 0.000000e+00 : f32
      %86 = vector.broadcast %cst_52 : f32 to vector<4x128xf32>
      %c0_53 = arith.constant 0 : index
      %c0_54 = arith.constant 0 : index
      %c0_55 = arith.constant 0 : index
      %87 = vector.load %arg5[%c0_53, %c0_54, %c0_55] : memref<1x4x128xf32, #tpu.memory_space<vmem>>, vector<1x4x128xf32>
      %88 = vector.shape_cast %87 : vector<1x4x128xf32> to vector<4x128xf32>
      %89 = vector.shape_cast %86 : vector<4x128xf32> to vector<1x4x128xf32>
      tpu.vector_store %arg5[%c0_53, %c0_54, %c0_55], %89 {strides = array<i32>} : memref<1x4x128xf32, #tpu.memory_space<vmem>>, vector<1x4x128xf32>,
      %cst_56 = arith.constant 0.000000e+00 : f32
      %90 = vector.broadcast %cst_56 : f32 to vector<4x128xf32>
      %c0_57 = arith.constant 0 : index
      %c0_58 = arith.constant 0 : index
      %c0_59 = arith.constant 0 : index
      %91 = vector.load %arg6[%c0_57, %c0_58, %c0_59] : memref<1x4x128xf32, #tpu.memory_space<vmem>>, vector<1x4x128xf32>
      %92 = vector.shape_cast %91 : vector<1x4x128xf32> to vector<4x128xf32>
      %93 = vector.shape_cast %90 : vector<4x128xf32> to vector<1x4x128xf32>
      tpu.vector_store %arg6[%c0_57, %c0_58, %c0_59], %93 {strides = array<i32>} : memref<1x4x128xf32, #tpu.memory_space<vmem>>, vector<1x4x128xf32>,
      %cst_60 = arith.constant 0.000000e+00 : f32
      %94 = vector.broadcast %cst_60 : f32 to vector<4x128xf32>
      %c0_61 = arith.constant 0 : index
      %c0_62 = arith.constant 0 : index
      %c0_63 = arith.constant 0 : index
      %95 = vector.load %arg7[%c0_61, %c0_62, %c0_63] : memref<1x4x128xf32, #tpu.memory_space<vmem>>, vector<1x4x128xf32>
      %96 = vector.shape_cast %95 : vector<1x4x128xf32> to vector<4x128xf32>
      %97 = vector.shape_cast %94 : vector<4x128xf32> to vector<1x4x128xf32>
      tpu.vector_store %arg7[%c0_61, %c0_62, %c0_63], %97 {strides = array<i32>} : memref<1x4x128xf32, #tpu.memory_space<vmem>>, vector<1x4x128xf32>,
    } else {
    }
    %c0 = arith.constant 0 : index
    %c0_1 = arith.constant 0 : index
    %c0_2 = arith.constant 0 : index
    %3 = vector.load %arg2[%c0, %c0_1, %c0_2] : memref<4x2x128xf32, #tpu.memory_space<vmem>>, vector<4x2x128xf32>
    %c0_3 = arith.constant 0 : index
    %c0_4 = arith.constant 0 : index
    %c0_5 = arith.constant 0 : index
    %4 = vector.load %arg3[%c0_3, %c0_4, %c0_5] : memref<4x2x128xf32, #tpu.memory_space<vmem>>, vector<4x2x128xf32>
    %5 = math.absf %3 : vector<4x2x128xf32>
    %cst = arith.constant 0.000000e+00 : f32
    %6 = vector.broadcast %cst : f32 to vector<4x2x128xf32>
    %7 = arith.subf %6, %5 : vector<4x2x128xf32>
    %8 = math.exp %7 : vector<4x2x128xf32>
    %cst_6 = arith.constant 0.000000e+00 : f32
    %9 = vector.broadcast %cst_6 : f32 to vector<4x2x128xf32>
    %10 = arith.subf %9, %3 : vector<4x2x128xf32>
    %cst_7 = arith.constant 0.000000e+00 : f32
    %11 = vector.broadcast %cst_7 : f32 to vector<4x2x128xf32>
    %12 = arith.maximumf %10, %11 : vector<4x2x128xf32>
    %13 = math.log1p %8 : vector<4x2x128xf32>
    %14 = arith.addf %12, %13 : vector<4x2x128xf32>
    %15 = arith.mulf %4, %3 : vector<4x2x128xf32>
    %16 = arith.subf %3, %15 : vector<4x2x128xf32>
    %cst_8 = arith.constant -2.000000e-01 : f32
    %17 = vector.broadcast %cst_8 : f32 to vector<4x2x128xf32>
    %18 = arith.mulf %17, %4 : vector<4x2x128xf32>
    %cst_9 = arith.constant 1.000000e+00 : f32
    %19 = vector.broadcast %cst_9 : f32 to vector<4x2x128xf32>
    %20 = arith.addf %19, %18 : vector<4x2x128xf32>
    %21 = arith.mulf %20, %14 : vector<4x2x128xf32>
    %22 = arith.addf %16, %21 : vector<4x2x128xf32>
    %cst_10 = arith.constant 1.000000e+00 : f32
    %23 = vector.broadcast %cst_10 : f32 to vector<4x2x128xf32>
    %24 = arith.addf %23, %8 : vector<4x2x128xf32>
    %25 = tpu.reciprocal %24 {approx = true} : vector<4x2x128xf32> -> vector<4x2x128xf32>
    %26 = arith.mulf %24, %25 : vector<4x2x128xf32>
    %cst_11 = arith.constant 2.000000e+00 : f32
    %27 = vector.broadcast %cst_11 : f32 to vector<4x2x128xf32>
    %28 = arith.subf %27, %26 : vector<4x2x128xf32>
    %29 = arith.mulf %25, %28 : vector<4x2x128xf32>
    %cst_12 = arith.constant 0.000000e+00 : f32
    %30 = vector.broadcast %cst_12 : f32 to vector<4x2x128xf32>
    %31 = arith.cmpf oge, %3, %30 : vector<4x2x128xf32>
    %cst_13 = arith.constant 1.000000e+00 : f32
    %cst_14 = arith.constant -1.000000e+00 : f32
    %32 = vector.broadcast %cst_13 : f32 to vector<4x2x128xf32>
    %33 = vector.broadcast %cst_14 : f32 to vector<4x2x128xf32>
    %34 = arith.select %31, %32, %33 : vector<4x2x128xi1>, vector<4x2x128xf32>
    %cst_15 = arith.constant 1.000000e+00 : f32
    %35 = vector.broadcast %cst_15 : f32 to vector<4x2x128xf32>
    %36 = arith.subf %35, %8 : vector<4x2x128xf32>
    %37 = arith.mulf %34, %36 : vector<4x2x128xf32>
    %38 = arith.mulf %37, %29 : vector<4x2x128xf32>
    %cst_16 = arith.constant 2.000000e+00 : f32
    %39 = vector.broadcast %cst_16 : f32 to vector<4x2x128xf32>
    %40 = arith.mulf %39, %4 : vector<4x2x128xf32>
    %cst_17 = arith.constant 1.000000e+00 : f32
    %41 = vector.broadcast %cst_17 : f32 to vector<4x2x128xf32>
    %42 = arith.subf %40, %41 : vector<4x2x128xf32>
    %cst_18 = arith.constant 6.000000e-01 : f32
    %43 = vector.broadcast %cst_18 : f32 to vector<4x2x128xf32>
    %44 = arith.mulf %4, %43 : vector<4x2x128xf32>
    %cst_19 = arith.constant 2.000000e-01 : f32
    %45 = vector.broadcast %cst_19 : f32 to vector<4x2x128xf32>
    %46 = arith.addf %44, %45 : vector<4x2x128xf32>
    %47 = arith.mulf %46, %46 : vector<4x2x128xf32>
    %cst_20 = arith.constant dense<0.000000e+00> : vector<4x128xf32>
    %48 = vector.multi_reduction <add>, %22, %cst_20 [1] : vector<4x2x128xf32> to vector<4x128xf32>
    %49 = arith.mulf %38, %42 : vector<4x2x128xf32>
    %50 = arith.mulf %47, %49 : vector<4x2x128xf32>
    %cst_21 = arith.constant dense<0.000000e+00> : vector<4x128xf32>
    %51 = vector.multi_reduction <add>, %50, %cst_21 [1] : vector<4x2x128xf32> to vector<4x128xf32>
    %52 = arith.mulf %38, %38 : vector<4x2x128xf32>
    %53 = arith.mulf %47, %52 : vector<4x2x128xf32>
    %cst_22 = arith.constant dense<0.000000e+00> : vector<4x128xf32>
    %54 = vector.multi_reduction <add>, %53, %cst_22 [1] : vector<4x2x128xf32> to vector<4x128xf32>
    %55 = arith.mulf %42, %42 : vector<4x2x128xf32>
    %56 = arith.mulf %47, %55 : vector<4x2x128xf32>
    %cst_23 = arith.constant dense<0.000000e+00> : vector<4x128xf32>
    %57 = vector.multi_reduction <add>, %56, %cst_23 [1] : vector<4x2x128xf32> to vector<4x128xf32>
    %c0_24 = arith.constant 0 : index
    %c0_25 = arith.constant 0 : index
    %c0_26 = arith.constant 0 : index
    %58 = vector.load %arg4[%c0_24, %c0_25, %c0_26] : memref<1x4x128xf32, #tpu.memory_space<vmem>>, vector<1x4x128xf32>
    %59 = vector.shape_cast %58 : vector<1x4x128xf32> to vector<4x128xf32>
    %60 = arith.addf %59, %48 : vector<4x128xf32>
    %c0_27 = arith.constant 0 : index
    %c0_28 = arith.constant 0 : index
    %c0_29 = arith.constant 0 : index
    %61 = vector.load %arg4[%c0_27, %c0_28, %c0_29] : memref<1x4x128xf32, #tpu.memory_space<vmem>>, vector<1x4x128xf32>
    %62 = vector.shape_cast %61 : vector<1x4x128xf32> to vector<4x128xf32>
    %63 = vector.shape_cast %60 : vector<4x128xf32> to vector<1x4x128xf32>
    tpu.vector_store %arg4[%c0_27, %c0_28, %c0_29], %63 {strides = array<i32>} : memref<1x4x128xf32, #tpu.memory_space<vmem>>, vector<1x4x128xf32>,
    %c0_30 = arith.constant 0 : index
    %c0_31 = arith.constant 0 : index
    %c0_32 = arith.constant 0 : index
    %64 = vector.load %arg5[%c0_30, %c0_31, %c0_32] : memref<1x4x128xf32, #tpu.memory_space<vmem>>, vector<1x4x128xf32>
    %65 = vector.shape_cast %64 : vector<1x4x128xf32> to vector<4x128xf32>
    %66 = arith.addf %65, %51 : vector<4x128xf32>
    %c0_33 = arith.constant 0 : index
    %c0_34 = arith.constant 0 : index
    %c0_35 = arith.constant 0 : index
    %67 = vector.load %arg5[%c0_33, %c0_34, %c0_35] : memref<1x4x128xf32, #tpu.memory_space<vmem>>, vector<1x4x128xf32>
    %68 = vector.shape_cast %67 : vector<1x4x128xf32> to vector<4x128xf32>
    %69 = vector.shape_cast %66 : vector<4x128xf32> to vector<1x4x128xf32>
    tpu.vector_store %arg5[%c0_33, %c0_34, %c0_35], %69 {strides = array<i32>} : memref<1x4x128xf32, #tpu.memory_space<vmem>>, vector<1x4x128xf32>,
    %c0_36 = arith.constant 0 : index
    %c0_37 = arith.constant 0 : index
    %c0_38 = arith.constant 0 : index
    %70 = vector.load %arg6[%c0_36, %c0_37, %c0_38] : memref<1x4x128xf32, #tpu.memory_space<vmem>>, vector<1x4x128xf32>
    %71 = vector.shape_cast %70 : vector<1x4x128xf32> to vector<4x128xf32>
    %72 = arith.addf %71, %54 : vector<4x128xf32>
    %c0_39 = arith.constant 0 : index
    %c0_40 = arith.constant 0 : index
    %c0_41 = arith.constant 0 : index
    %73 = vector.load %arg6[%c0_39, %c0_40, %c0_41] : memref<1x4x128xf32, #tpu.memory_space<vmem>>, vector<1x4x128xf32>
    %74 = vector.shape_cast %73 : vector<1x4x128xf32> to vector<4x128xf32>
    %75 = vector.shape_cast %72 : vector<4x128xf32> to vector<1x4x128xf32>
    tpu.vector_store %arg6[%c0_39, %c0_40, %c0_41], %75 {strides = array<i32>} : memref<1x4x128xf32, #tpu.memory_space<vmem>>, vector<1x4x128xf32>,
    %c0_42 = arith.constant 0 : index
    %c0_43 = arith.constant 0 : index
    %c0_44 = arith.constant 0 : index
    %76 = vector.load %arg7[%c0_42, %c0_43, %c0_44] : memref<1x4x128xf32, #tpu.memory_space<vmem>>, vector<1x4x128xf32>
    %77 = vector.shape_cast %76 : vector<1x4x128xf32> to vector<4x128xf32>
    %78 = arith.addf %77, %57 : vector<4x128xf32>
    %c0_45 = arith.constant 0 : index
    %c0_46 = arith.constant 0 : index
    %c0_47 = arith.constant 0 : index
    %79 = vector.load %arg7[%c0_45, %c0_46, %c0_47] : memref<1x4x128xf32, #tpu.memory_space<vmem>>, vector<1x4x128xf32>
    %80 = vector.shape_cast %79 : vector<1x4x128xf32> to vector<4x128xf32>
    %81 = vector.shape_cast %78 : vector<4x128xf32> to vector<1x4x128xf32>
    tpu.vector_store %arg7[%c0_45, %c0_46, %c0_47], %81 {strides = array<i32>} : memref<1x4x128xf32, #tpu.memory_space<vmem>>, vector<1x4x128xf32>,
    return
  }
  func.func @transform_0(%arg0: i32, %arg1: i32) -> (i32, i32, i32) {
    %c0_i32 = arith.constant 0 : i32
    %c0_i32_0 = arith.constant 0 : i32
    return %arg0, %arg1, %c0_i32 : i32, i32, i32
  }
  func.func @transform_1(%arg0: i32, %arg1: i32) -> (i32, i32, i32) {
    %c0_i32 = arith.constant 0 : i32
    %c0_i32_0 = arith.constant 0 : i32
    return %arg0, %arg1, %c0_i32 : i32, i32, i32
  }
  func.func @transform_2(%arg0: i32, %arg1: i32) -> (i32, i32, i32) {
    %c0_i32 = arith.constant 0 : i32
    %c0_i32_0 = arith.constant 0 : i32
    %c0_i32_1 = arith.constant 0 : i32
    return %arg0, %c0_i32, %c0_i32_0 : i32, i32, i32
  }
  func.func @transform_3(%arg0: i32, %arg1: i32) -> (i32, i32, i32) {
    %c0_i32 = arith.constant 0 : i32
    %c0_i32_0 = arith.constant 0 : i32
    %c0_i32_1 = arith.constant 0 : i32
    return %arg0, %c0_i32, %c0_i32_0 : i32, i32, i32
  }
  func.func @transform_4(%arg0: i32, %arg1: i32) -> (i32, i32, i32) {
    %c0_i32 = arith.constant 0 : i32
    %c0_i32_0 = arith.constant 0 : i32
    %c0_i32_1 = arith.constant 0 : i32
    return %arg0, %c0_i32, %c0_i32_0 : i32, i32, i32
  }
  func.func @transform_5(%arg0: i32, %arg1: i32) -> (i32, i32, i32) {
    %c0_i32 = arith.constant 0 : i32
    %c0_i32_0 = arith.constant 0 : i32
    %c0_i32_1 = arith.constant 0 : i32
    return %arg0, %c0_i32, %c0_i32_0 : i32, i32, i32
  }
}

</mosaic_0001>

<bundles_post_ra>
// kernel: tpu_custom_call.1
= control target key start
LH: loop header
LB: loop body
LE: loop exit
PB: predicated region body
PF: predicated region fallthrough
CT: control target
= control target key end

     0   :  { %s1814_s0 = inlined_call_operand.hbm [shape: f32[8,2,128], index: 0, kind: input, shape index: {}]   ;;  %s1815_s1 = inlined_call_operand.hbm [shape: f32[8,2,128], index: 1, kind: input, shape index: {}]   ;;  %s1816_s2 = inlined_call_operand.hbm [shape: f32[2,4,128], index: 2, kind: output, shape index: {0}]   ;;  %s1817_s3 = inlined_call_operand.hbm [shape: f32[2,4,128], index: 3, kind: output, shape index: {1}]   ;;  %s1818_s4 = inlined_call_operand.hbm [shape: f32[2,4,128], index: 4, kind: output, shape index: {2}]   ;;  %s1819_s5 = inlined_call_operand.hbm [shape: f32[2,4,128], index: 5, kind: output, shape index: {3}]  }
   0x1   :  { %1823 = sst [smem:[#allocation21_spill]] %s1814_s0 }
   0x2   :  { %11 = vsyncpa [#allocation3], 0 }
   0x3   :  { %13 = vsyncpa [#allocation3 + $0x1], 0 }
   0x4   :  { %14 = vsyncpa [#allocation6], 0 }
   0x5   :  { %16 = vsyncpa [#allocation6 + $0x1], 0 }
   0x6   :  { %17 = vsyncpa [#allocation4], 0 }
   0x7   :  { %19 = vsyncpa [#allocation4 + $0x1], 0 }
   0x8   :  { %20 = vsyncpa [#allocation9], 0 }
   0x9   :  { %22 = vsyncpa [#allocation9 + $0x1], 0 }
   0xa   :  { %23 = vsyncpa [#allocation12], 0 }
   0xb   :  { %25 = vsyncpa [#allocation12 + $0x1], 0  ;;  %s1374_s18 = smov 0   ;;  %s1376_s19 = smov 0  }
   0xc   :  { %s1378_s20 = smov 0   ;;  %s1380_s21 = smov 0  }
   0xd   :  { %s1382_s22 = smov 0   ;;  %s1384_s23 = smov 0  }
   0xe LB: > { %1824 = sst [smem:[#allocation18_spill]] %s1334_s22  ;;  %s1405_s24 = sadd.s32 4294967295, %s1338_s23   ;;  %s1338_s23 = sphi %s1384_s23, %s31_s23   ;;  %s1334_s22 = sphi %s1382_s22, %s1842_s22   ;;  %s1330_s21 = sphi %s1380_s21, %s1841_s21   ;;  %s1326_s20 = sphi %s1378_s20, %s1845_s20   ;;  %s1322_s19 = sphi %s1376_s19, %s1844_s19   ;;  %s1318_s18 = sphi %s1374_s18, %s1843_s18  }
   0xf   : > { %s1820_s25 = sadd.s32 4294967294, %s1338_s23   ;;  %s43_s26 = sadd.s32 1, %s1334_s22 }
  0x10   : > { %s52_s27 = sadd.s32 1, %s1326_s20  ;;  %p45_p0 = scmp.ge.s32.totalorder %s43_s26, 2 }
  0x11   : > { %p59_p1 = scmp.ne.s32.totalorder %s1326_s20, %s1322_s19  ;;  %p60_p2 = scmp.eq.s32.totalorder %s1338_s23, 0 }
  0x12   : > { %p65_p3 = scmp.ne.s32.totalorder %s1322_s19, %s1318_s18  ;;  %s1847_s26 = smov (%p45_p0, %s43_s26), 0 }
  0x13   : > { %1825 = sst [smem:[#allocation19_spill]] %s1847_s26  ;;  %p1417_p4 = por %p60_p2, %p59_p1 }
  0x14   : > { %p66_p5 = scmp.eq.s32.totalorder %s1405_s24, 0  ;;  %s47_s29 = ssub.s32 %s1334_s22, %s1847_s26 }
  0x15   : > { %p117_p6 = scmp.eq.s32.totalorder %s1405_s24, 1  ;;  %p50_p7 = scmp.eq.s32.totalorder %s47_s29, 0 }
  0x16   : > { %p1425_p8 = por %p66_p5, %p65_p3  ;;  %p123_p10 = scmp.eq.s32.totalorder %s1820_s25, 1 }
  0x17   : > { %p1429_p9 = por %p117_p6, %p59_p1  ;;  %p960_p12 = scmp.ge.s32.totalorder %s1338_s23, 2 }
  0x18   : > { %s1436_s7 = scalar_select %p50_p7, %s1326_s20, %s52_s27  }
  0x19   : > { %p1438_p11 = por %p123_p10, %p65_p3  ;;  %p1022_p13 = scmp.lt.s32.totalorder %s1338_s23, 2 }
  0x1a   : > { %1829 = sst [smem:[#allocation20_spill]] %s1436_s7  ;;  %s1445_s9 = sand.u32 1, %s1326_s20  }
  0x1b   : > { %s961_s10 = sshll.u32 %s1445_s9, 3  ;;  %s988_s11 = sshll.u32 %s1334_s22, 3 }
  0x1c   : > { %s1831_s0 = sld [smem:[#allocation21_spill]]  ;;  %s225_s15 = scalar_lea.vmem [#allocation2], %s961_s10 }
  0x1d   : > { %s234_s16 = sshll.u32 %s225_s15, 4  ;;  %p1454_p0 = pnand %p1022_p13, %p1417_p4  ;;  %s235_s16 = int_to_ptr.vmem [resolvable:$true] %s234_s16 }
  0x1e   : > { %p967_p1 = scmp.ge.s32.totalorder %s1338_s23, 1  ;;  %s222_s29 = scalar_lea.sflag [#allocation3], %s1445_s9 }
  0x1f   : > { %s1340_s25 = smov 32   ;;  %s1341_s26 = smov 2  }
  0x20   : > { %p265_p2 = scmp.lt.s32.totalorder %s1338_s23, 3  ;;  %s248_s28 = scalar_lea.vmem [#allocation5], %s961_s10 }
  0x21   : > { %s245_s22 = scalar_lea.sflag [#allocation6], %s1445_s9 }
  0x22   : > { %s231_s14 = scalar_lea.hbm %s1831_s0, %s988_s11  ;;  %p266_p3 = pnand %p967_p1, %p265_p2 }
  0x23   : > { %s232_s17 = sshll.u32 %s231_s14, 4  ;;  %s254_s14 = scalar_lea.hbm %s1815_s1, %s988_s11  ;;  %s233_s17 = int_to_ptr.hbm [resolvable:$true] %s232_s17 }
  0x24   : > { %1005 = dma.hbm_to_vmem [thread:$0]  (!%p1454_p0), %s233_s17, 128, %s235_s16, %s222_s29, %s1340_s25, %s1340_s25, %s1341_s26  }
  0x25   : > { %s255_s15 = sshll.u32 %s254_s14, 4  ;;  %s257_s0 = sshll.u32 %s248_s28, 4  ;;  %s256_s15 = int_to_ptr.hbm [resolvable:$true] %s255_s15  ;;  %s258_s0 = int_to_ptr.vmem [resolvable:$true] %s257_s0 }
  0x26   : > { %1008 = dma.hbm_to_vmem [thread:$0]  (!%p1454_p0), %s256_s15, 128, %s258_s0, %s245_s22, %s1340_s25, %s1340_s25, %s1341_s26  }
  0x27   : > { %269 = sbr.rel (%p266_p3) target bundleno = 150 (0x96), region = 28  ;;  %s1470_s7 = sand.u32 (!%p266_p3), 1, %s1322_s19  }
  0x28   : > { %s968_s16 = sshll.u32 (!%p266_p3), %s1470_s7, 3  ;;  %s272_s17 = scalar_lea.sflag (!%p266_p3), [#allocation3], %s1470_s7 }
  0x29   : > { %s275_s29 = scalar_lea.vmem (!%p266_p3), [#allocation2], %s968_s16 }
  0x2c   : > { %1297 = dma.done.wait (%p1425_p8), %s272_s17, 128  }
  0x2d   : > { %1299 = vsyncadd (%p1425_p8), %s272_s17, 4294967168  ;;  %s282_s9 = scalar_lea.sflag [#allocation6], %s1470_s7  ;;  %s285_s10 = scalar_lea.vmem [#allocation5], %s968_s16 }
  0x2e   : > { %1301 = dma.done.wait (%p1425_p8), %s282_s9, 128  }
  0x2f   : > { %1303 = vsyncadd (%p1425_p8), %s282_s9, 4294967168  ;;  %s970_s0 = sshll.u32 %s1470_s7, 2  ;;  %v1342_v0 = vmov 0.0   ;;  %v1496_v1 = vld [vmem:[%s275_s29] sm:$0x3]  ;;  %v1343_v24 = vmov -1.0  }
  0x30   : > { %s1484_s22 = scalar_lea.vmem [#allocation8], %s970_s0  ;;  %s1487_s25 = scalar_lea.vmem [#allocation7], %s970_s0  ;;  %v1498_v2 = vld [vmem:[%s275_s29 + $0x2] sm:$0x3]  ;;  %v1500_v3 = vld [vmem:[%s275_s29 + $0x4] sm:$0x3] }
  0x31   : > { %340 = vst [vmem:[%s1484_s22] sm:$0xf] %v1342_v0  ;;  %s1490_s26 = scalar_lea.vmem [#allocation10], %s970_s0  ;;  %s1493_s11 = scalar_lea.vmem [#allocation11], %s970_s0  ;;  %v1502_v4 = vld [vmem:[%s275_s29 + $0x6] sm:$0x3]  ;;  %vm459_vm0 = vcmp.ge.f32.partialorder %v1496_v1, 0.0 }
  0x32   : > { %339 = vst [vmem:[%s1487_s25] sm:$0xf] %v1342_v0  ;;  %v1504_v5 = vld [vmem:[%s285_s10] sm:$0x3]  ;;  %v1506_v6 = vld [vmem:[%s285_s10 + $0x2] sm:$0x3]  ;;  %vm460_vm1 = vcmp.ge.f32.partialorder %v1498_v2, 0.0 }
  0x33   : > { %341 = vst [vmem:[%s1490_s26] sm:$0xf] %v1342_v0  ;;  %v351_v7 = vand.u32 2147483647, %v1496_v1  ;;  %v352_v8 = vand.u32 2147483647, %v1498_v2  ;;  %v1516_v13 = vmul.f32 %v1504_v5, %v1496_v1  ;;  %v1520_v14 = vmul.f32 %v1506_v6, %v1498_v2  ;;  %s1647_s30 = sshll.u32 %s1330_s21, 2 }
  0x34   : > { %342 = vst [vmem:[%s1493_s11] sm:$0xf] %v1342_v0  ;;  %v353_v9 = vand.u32 2147483647, %v1500_v3  ;;  %v354_v10 = vand.u32 2147483647, %v1502_v4  ;;  %vm461_vm2 = vcmp.ge.f32.partialorder %v1500_v3, 0.0  ;;  %s723_s12 = scalar_lea.hbm %s1817_s3, %s1647_s30 }
  0x35   : > { %v1512_v11 = vld [vmem:[%s285_s10 + $0x4] sm:$0x3]  ;;  %v355_v12 = vsub.f32 0.0, %v351_v7  ;;  %v1522_v15 = vld [vmem:[%s285_s10 + $0x6] sm:$0x3]  ;;  %v356_v16 = vsub.f32 0.0, %v352_v8  ;;  %v419_v49 = vsub.f32 %v1496_v1, %v1516_v13 }
  0x36   : > { %v357_v17 = vsub.f32 0.0, %v353_v9  ;;  %v358_v18 = vsub.f32 0.0, %v354_v10  ;;  %vm462_vm3 = vcmp.ge.f32.partialorder %v1502_v4, 0.0  ;;  %v1530_v23 = vmul.f32 %v1512_v11, %v1500_v3  ;;  %s688_s13 = sand.u32 1, %s1405_s24   ;;  %s725_s14 = sshll.u32 %s1484_s22, 4  ;;  %s1671_s14 = int_to_ptr.vmem [resolvable:$true] %s725_s14 }
  0x37   : > { %v359_v19 = vmul.f32 1.442695, %v355_v12  ;;  %v361_v20 = vmul.f32 1.442695, %v356_v16  ;;  %v463_v25 = vsel %vm459_vm0, 1.0, %v1343_v24  ;;  %v479_v26 = vmul.f32 2.0, %v1504_v5 }
  0x38   : > { %v363_v21 = vmul.f32 1.442695, %v357_v17  ;;  %v365_v22 = vmul.f32 1.442695, %v358_v18  ;;  %v480_v27 = vmul.f32 2.0, %v1506_v6  ;;  %v481_v28 = vmul.f32 2.0, %v1512_v11 }
  0x39   : > { %1076 = vpow2.f32 %v359_v19  ;;  %v482_v29 = vmul.f32 2.0, %v1522_v15  ;;  %v487_v30 = vmul.f32 0.6, %v1504_v5  ;;  %v464_v31 = vsel %vm460_vm1, 1.0, %v1343_v24  ;;  %s1661_s15 = sshll.u32 %s723_s12, 4  ;;  %s1684_s28 = scalar_lea.sflag [#allocation9], %s688_s13  ;;  %s728_s15 = int_to_ptr.hbm [resolvable:$true] %s1661_s15 }
  0x3a   : > { %1078 = vpow2.f32 %v361_v20  ;;  %v465_v32 = vsel %vm461_vm2, 1.0, %v1343_v24  ;;  %v488_v33 = vmul.f32 0.6, %v1506_v6  ;;  %v466_v34 = vsel %vm462_vm3, 1.0, %v1343_v24  ;;  %s1174_s16 = sshra.s32 %s728_s15, 4  ;;  %s1180_s10 = scalar_lea.hbm %s1817_s3, 8  ;;  %s1175_s16 = int_to_ptr.hbm [resolvable:$true] %s1174_s16 }
  0x3b   : > { %1080 = vpow2.f32 %v363_v21  ;;  %v1544_v35 = vadd.f32 -1.0, %v479_v26  ;;  %v489_v36 = vmul.f32 0.6, %v1512_v11  ;;  %v490_v37 = vmul.f32 0.6, %v1522_v15  ;;  %s1176_s17 = scalar_lea.hbm %s1175_s16, 4  ;;  %p1181_p7 = scmp.lt.s32.totalorder %s1175_s16, %s1817_s3 }
  0x3c   : > { %1082 = vpow2.f32 %v365_v22  ;;  %v491_v38 = vadd.f32 0.2, %v487_v30  ;;  %v492_v39 = vadd.f32 0.2, %v488_v33  ;;  %v1550_v40 = vmul.f32 %v1522_v15, %v1502_v4  ;;  %p1177_p4 = scmp.ne.s32.totalorder %s1175_s16, %s1176_s17  ;;  %p1182_p8 = scmp.lt.s32.totalorder %s1180_s10, %s1176_s17 }
  0x3d   : > { %v1552_v41 = vadd.f32 -1.0, %v480_v27  ;;  %v1554_v42 = vadd.f32 -1.0, %v481_v28  ;;  %v1556_v43 = vadd.f32 -1.0, %v482_v29  ;;  %v493_v44 = vadd.f32 0.2, %v489_v36 }
  0x3e   : > { %v494_v46 = vadd.f32 0.2, %v490_v37  ;;  %v367_v47 = vsub.f32 0.0, %v1496_v1  ;;  %v368_v48 = vsub.f32 0.0, %v1498_v2  ;;  %v1562_v53 = vmul.f32 %v491_v38, %v491_v38  ;;  %p1178_p5 = pnand %p1177_p4, %p1429_p9  ;;  %p1183_p10 = por %p1182_p8, %p1181_p7 }
  0x3f   : > { %v1077_v45 = vpop.eup %1076  ;;  %v1564_v54 = vmul.f32 %v492_v39, %v492_v39  ;;  %v1566_v58 = vmul.f32 %v493_v44, %v493_v44  ;;  %v369_v59 = vsub.f32 0.0, %v1500_v3  ;;  %v370_v63 = vsub.f32 0.0, %v1502_v4 }
  0x40   : > { %v1079_v50 = vpop.eup %1078  ;;  %v375_v51 = vadd.f32 1.0, %v1077_v45  ;;  %v467_v52 = vsub.f32 1.0, %v1077_v45  ;;  %v1574_v8 = vmul.f32 %v494_v46, %v494_v46  ;;  %v1576_v12 = vmax.f32 %v367_v47, 0.0  ;;  %p1179_p6 = pneg %p1178_p5 }
  0x41   : > { %v1081_v55 = vpop.eup %1080  ;;  %v384_v56 = vadd.f32 1.0, %v1079_v50  ;;  %v468_v57 = vsub.f32 1.0, %v1079_v50  ;;  %v1578_v18 = vmax.f32 %v368_v48, 0.0  ;;  %v1580_v19 = vmax.f32 %v369_v59, 0.0 }
  0x42   : > { %v1569_v60 = vpop.eup %1082  ;;  %v393_v61 = vadd.f32 1.0, %v1081_v55  ;;  %1084 = vrcp.f32 %v375_v51  ;;  %v469_v62 = vsub.f32 1.0, %v1081_v55  ;;  %v471_v9 = vmul.f32 %v467_v52, %v463_v25  ;;  %p1184_p13 = pnand %p1183_p10, %p1179_p6 }
  0x43   : > { %v402_v0 = vadd.f32 1.0, %v1569_v60  ;;  %1086 = vrcp.f32 %v384_v56  ;;  %v470_v7 = vsub.f32 1.0, %v1569_v60  ;;  %v472_v10 = vmul.f32 %v468_v57, %v464_v31 }
  0x44   : > { %1088 = vrcp.f32 %v393_v61  ;;  %v473_v16 = vmul.f32 %v469_v62, %v465_v32  ;;  %v1582_v20 = vmax.f32 %v370_v63, 0.0  ;;  %v378_v21 = vmul.f32 -0.5, %v1077_v45 }
  0x45   : > { %1090 = vrcp.f32 %v402_v0  ;;  %v474_v17 = vmul.f32 %v470_v7, %v466_v34  ;;  %v381_v22 = vand.u32 2147483647, %v1077_v45  ;;  %v387_v24 = vmul.f32 -0.5, %v1079_v50 }
  0x46   : > { %1092 = vlog2.f32 %v375_v51  ;;  %v390_v26 = vand.u32 2147483647, %v1079_v50  ;;  %v379_v25 = vadd.f32 1.0, %v378_v21  ;;  %v396_v28 = vmul.f32 -0.5, %v1081_v55 }
  0x47   : > { %1094 = vlog2.f32 %v384_v56  ;;  %v399_v29 = vand.u32 2147483647, %v1081_v55  ;;  %vm1584_vm4 = vcmp.lt.f32.partialorder %v381_v22, 0.0004427343  ;;  %v388_v33 = vadd.f32 1.0, %v387_v24 }
  0x48   : > { %v1085_v27 = vpop.eup %1084  ;;  %1096 = vlog2.f32 %v393_v61  ;;  %vm1588_vm5 = vcmp.lt.f32.partialorder %v390_v26, 0.0004427343  ;;  %vm499_vm6 = vcmask 1041408   ;;  %v380_v38 = vmul.f32 %v1077_v45, %v379_v25 }
  0x49   : > { %v1087_v30 = vpop.eup %1086  ;;  %v447_v31 = vmul.f32 %v1085_v27, %v375_v51  ;;  %v397_v39 = vadd.f32 1.0, %v396_v28  ;;  %vm1592_vm7 = vcmp.lt.f32.partialorder %v399_v29, 0.0004427343  ;;  %v389_v51 = vmul.f32 %v1079_v50, %v388_v33 }
  0x4a   : > { %v1089_v36 = vpop.eup %1088  ;;  %v448_v37 = vmul.f32 %v1087_v30, %v384_v56  ;;  %1098 = vlog2.f32 %v402_v0  ;;  %v405_v63 = vmul.f32 -0.5, %v1569_v60  ;;  %v408_v22 = vand.u32 2147483647, %v1569_v60 }
  0x4b   : > { %v1091_v46 = vpop.eup %1090  ;;  %v449_v47 = vmul.f32 %v1089_v36, %v393_v61  ;;  %v451_v48 = vsub.f32 2.0, %v447_v31  ;;  %v398_v62 = vmul.f32 %v1081_v55, %v397_v39  ;;  %vm641_vm9 = vcmask 1041409  }
  0x4c   : > { %v1093_v52 = vpop.eup %1092  ;;  %v450_v57 = vmul.f32 %v1091_v46, %v402_v0  ;;  %v452_v59 = vsub.f32 2.0, %v448_v37  ;;  %v406_v61 = vadd.f32 1.0, %v405_v63  ;;  %vm409_vm8 = vcmp.lt.f32.partialorder %v408_v22, 0.0004427343 }
  0x4d   : > { %v1095_v7 = vpop.eup %1094  ;;  %v453_v56 = vsub.f32 2.0, %v449_v47  ;;  %v455_v21 = vmul.f32 %v1085_v27, %v451_v48  ;;  %v377_v45 = vmul.f32 0.6931472, %v1093_v52  ;;  %v422_v63 = vsub.f32 %v1502_v4, %v1550_v40 }
  0x4e   : > { %v1097_v24 = vpop.eup %1096  ;;  %v454_v26 = vsub.f32 2.0, %v450_v57  ;;  %v456_v25 = vmul.f32 %v1087_v30, %v452_v59  ;;  %v386_v28 = vmul.f32 0.6931472, %v1095_v7  ;;  %v407_v37 = vmul.f32 %v1569_v60, %v406_v61 }
  0x4f   : > { %v457_v29 = vmul.f32 %v1089_v36, %v453_v56  ;;  %v1598_v50 = vmul.f32 %v471_v9, %v455_v21  ;;  %v383_v0 = vsel %vm1584_vm4, %v380_v38, %v377_v45  ;;  %v395_v55 = vmul.f32 0.6931472, %v1097_v24 }
  0x50   : > { %v458_v31 = vmul.f32 %v1091_v46, %v454_v26  ;;  %v1602_v33 = vmul.f32 %v472_v10, %v456_v25  ;;  %v392_v27 = vsel %vm1588_vm5, %v389_v51, %v386_v28  ;;  %v1099_v39 = vpop.eup %1098  ;;  %v411_v34 = vadd.f32 %v383_v0, %v1576_v12 }
  0x51   : > { %v1607_v47 = vmul.f32 %v473_v16, %v457_v29  ;;  %v528_v30 = vmul.f32 %v1544_v35, %v1598_v50  ;;  %v401_v9 = vsel %vm1592_vm7, %v398_v62, %v395_v55  ;;  %v404_v36 = vmul.f32 0.6931472, %v1099_v39 }
  0x52   : > { %v1613_v32 = vmul.f32 %v474_v17, %v458_v31  ;;  %v529_v10 = vmul.f32 %v1552_v41, %v1602_v33  ;;  %v412_v38 = vadd.f32 %v392_v27, %v1578_v18  ;;  %v413_v46 = vadd.f32 %v401_v9, %v1580_v19 }
  0x53   : > { %v530_v60 = vmul.f32 %v1554_v42, %v1607_v47  ;;  %v532_v16 = vmul.f32 %v528_v30, %v1562_v53  ;;  %v410_v48 = vsel %vm409_vm8, %v407_v37, %v404_v36  ;;  %v420_v51 = vsub.f32 %v1498_v2, %v1520_v14 }
  0x54   : > { %v531_v44 = vmul.f32 %v1556_v43, %v1613_v32  ;;  %v533_v17 = vmul.f32 %v529_v10, %v1564_v54  ;;  %v414_v57 = vadd.f32 %v410_v48, %v1582_v20  ;;  %v421_v18 = vsub.f32 %v1500_v3, %v1530_v23 }
  0x55   : > { %v534_v12 = vmul.f32 %v530_v60, %v1566_v58  ;;  %v536_v52 = vsel %vm499_vm6, %v532_v16, 0.0  ;;  %v423_v14 = vmul.f32 -0.2, %v1504_v5  ;;  %v424_v56 = vmul.f32 -0.2, %v1506_v6 }
  0x56   : > { %v535_v19 = vmul.f32 %v531_v44, %v1574_v8  ;;  %v537_v59 = vrot.slane %v536_v52, 4  ;;  %v543_v62 = vsel %vm499_vm6, %v533_v17, 0.0  ;;  %v425_v3 = vmul.f32 -0.2, %v1512_v11 }
  0x57   : > { %v544_v7 = vrot.slane %v543_v62, 4  ;;  %v550_v2 = vsel %vm499_vm6, %v534_v12, 0.0  ;;  %vm643_vm10 = vcmask 1042434   ;;  %v426_v24 = vmul.f32 -0.2, %v1522_v15 }
  0x58   : > { %v538_v21 = vadd.f32 %v537_v59, %v536_v52  ;;  %v551_v20 = vrot.slane %v550_v2, 4  ;;  %v557_v45 = vsel %vm499_vm6, %v535_v19, 0.0  ;;  %v427_v4 = vadd.f32 1.0, %v423_v14  ;;  %v650_v59 = vld [vmem:[%s1484_s22] sm:$0xf] }
  0x59   : > { %v545_v23 = vadd.f32 %v544_v7, %v543_v62  ;;  %v558_v22 = vrot.slane %v557_v45, 4  ;;  %vm645_vm11 = vcmask 1043459   ;;  %v428_v5 = vadd.f32 1.0, %v424_v56 }
  0x5a   : > { %v539_v40 = vrot.slane %v538_v21, 2  ;;  %v552_v26 = vadd.f32 %v551_v20, %v550_v2  ;;  %v429_v25 = vadd.f32 1.0, %v425_v3  ;;  %v430_v61 = vadd.f32 1.0, %v426_v24 }
  0x5b   : > { %v546_v6 = vrot.slane %v545_v23, 2  ;;  %v559_v28 = vadd.f32 %v558_v22, %v557_v45  ;;  %v431_v29 = vmul.f32 %v427_v4, %v411_v34  ;;  %v432_v31 = vmul.f32 %v428_v5, %v412_v38 }
  0x5c   : > { %v540_v0 = vadd.f32 %v539_v40, %v538_v21  ;;  %v553_v55 = vrot.slane %v552_v26, 2  ;;  %v433_v11 = vmul.f32 %v429_v25, %v413_v46  ;;  %v434_v39 = vmul.f32 %v430_v61, %v414_v57 }
  0x5d   : > { %v547_v27 = vadd.f32 %v546_v6, %v545_v23  ;;  %v560_v37 = vrot.slane %v559_v28, 2  ;;  %v435_v15 = vadd.f32 %v431_v29, %v419_v49  ;;  %v436_v10 = vadd.f32 %v432_v31, %v420_v51 }
  0x5e   : > { %v541_v30 = vrot.slane %v540_v0, 1  ;;  %v554_v9 = vadd.f32 %v553_v55, %v552_v26  ;;  %v437_v36 = vadd.f32 %v433_v11, %v421_v18  ;;  %v438_v16 = vadd.f32 %v434_v39, %v422_v63 }
  0x5f   : > { %v548_v60 = vrot.slane %v547_v27, 1  ;;  %v561_v34 = vadd.f32 %v560_v37, %v559_v28  ;;  %v500_v38 = vsel %vm499_vm6, %v435_v15, 0.0  ;;  %v507_v1 = vsel %vm499_vm6, %v436_v10, 0.0 }
  0x60   : > { %v542_v46 = vadd.f32 %v541_v30, %v540_v0  ;;  %v555_v44 = vrot.slane %v554_v9, 1  ;;  %v501_v17 = vrot.slane %v500_v38, 4  ;;  %v508_v48 = vrot.slane %v507_v1, 4 }
  0x61   : > { %v549_v13 = vadd.f32 %v548_v60, %v547_v27  ;;  %v562_v49 = vrot.slane %v561_v34, 1  ;;  %v514_v51 = vsel %vm499_vm6, %v437_v36, 0.0  ;;  %v521_v18 = vsel %vm499_vm6, %v438_v16, 0.0 }
  0x62   : > { %v556_v12 = vadd.f32 %v555_v44, %v554_v9  ;;  %v502_v52 = vadd.f32 %v501_v17, %v500_v38  ;;  %v515_v57 = vrot.slane %v514_v51, 4  ;;  %v509_v63 = vadd.f32 %v508_v48, %v507_v1 }
  0x63   : > { %v563_v19 = vadd.f32 %v562_v49, %v561_v34  ;;  %v655_v62 = vsel %vm641_vm9, %v549_v13, %v542_v46  ;;  %v522_v7 = vrot.slane %v521_v18, 4  ;;  %v564_v21 = vmul.f32 %v1598_v50, %v1598_v50 }
  0x64   : > { %v656_v2 = vsel %vm643_vm10, %v556_v12, %v655_v62  ;;  %v503_v14 = vrot.slane %v502_v52, 2  ;;  %v516_v56 = vadd.f32 %v515_v57, %v514_v51  ;;  %v510_v45 = vrot.slane %v509_v63, 2 }
  0x65   : > { %v657_v20 = vsel %vm645_vm11, %v563_v19, %v656_v2  ;;  %v523_v3 = vadd.f32 %v522_v7, %v521_v18  ;;  %v565_v23 = vmul.f32 %v1602_v33, %v1602_v33  ;;  %v566_v40 = vmul.f32 %v1607_v47, %v1607_v47 }
  0x66   : > { %v659_v22 = vadd.f32 %v657_v20, %v650_v59  ;;  %v504_v24 = vadd.f32 %v503_v14, %v502_v52  ;;  %v517_v4 = vrot.slane %v516_v56, 2  ;;  %v511_v26 = vadd.f32 %v510_v45, %v509_v63 }
  0x67   : > { %v524_v5 = vrot.slane %v523_v3, 2  ;;  %v567_v50 = vmul.f32 %v1613_v32, %v1613_v32  ;;  %v568_v25 = vmul.f32 %v564_v21, %v1562_v53  ;;  %v569_v28 = vmul.f32 %v565_v23, %v1564_v54 }
  0x68   : > { %660 = vst [vmem:[%s1484_s22] sm:$0xf] %v659_v22  ;;  %v505_v33 = vrot.slane %v504_v24, 1  ;;  %v518_v6 = vadd.f32 %v517_v4, %v516_v56  ;;  %v570_v61 = vmul.f32 %v566_v40, %v1566_v58  ;;  %v512_v47 = vrot.slane %v511_v26, 1 }
  0x69   : > { %v525_v29 = vadd.f32 %v524_v5, %v523_v3  ;;  %v571_v0 = vmul.f32 %v567_v50, %v1574_v8  ;;  %v572_v55 = vsel %vm499_vm6, %v568_v25, 0.0 }
  0x6a   : > { %1187 = shalt.err (!%p1184_p13)
}
  0x6b   : > { %995 = dma.vmem_to_hbm [thread:$0]  (%p1429_p9), %s1671_s14, 64, %s728_s15, %s1684_s28   ;;  %v506_v32 = vadd.f32 %v505_v33, %v504_v24  ;;  %v519_v31 = vrot.slane %v518_v6, 1  ;;  %v573_v11 = vrot.slane %v572_v55, 4  ;;  %v579_v27 = vsel %vm499_vm6, %v569_v28, 0.0  ;;  %v636_v16 = vld [vmem:[%s1487_s25] sm:$0xf] }
  0x6c   : > { %s709_s21 = scalar_lea.hbm %s1816_s2, %s1647_s30  ;;  %v513_v37 = vadd.f32 %v512_v47, %v511_v26  ;;  %v526_v39 = vrot.slane %v525_v29, 1  ;;  %v580_v15 = vrot.slane %v579_v27, 4  ;;  %v586_v30 = vsel %vm499_vm6, %v570_v61, 0.0  ;;  %s711_s12 = sshll.u32 %s1487_s25, 4  ;;  %s1718_s12 = int_to_ptr.vmem [resolvable:$true] %s711_s12 }
  0x6d   : > { %v520_v9 = vadd.f32 %v519_v31, %v518_v6  ;;  %v574_v10 = vadd.f32 %v573_v11, %v572_v55  ;;  %v587_v36 = vrot.slane %v586_v30, 4  ;;  %v593_v60 = vsel %vm499_vm6, %v571_v0, 0.0  ;;  %s1708_s13 = sshll.u32 %s709_s21, 4  ;;  %s684_s14 = scalar_lea.sflag [#allocation4], %s1470_s7  ;;  %s714_s13 = int_to_ptr.hbm [resolvable:$true] %s1708_s13 }
  0x6e   : > { %v527_v34 = vadd.f32 %v526_v39, %v525_v29  ;;  %v642_v38 = vsel %vm641_vm9, %v513_v37, %v506_v32  ;;  %v581_v46 = vadd.f32 %v580_v15, %v579_v27  ;;  %v594_v44 = vrot.slane %v593_v60, 4  ;;  %s1202_s15 = sshra.s32 %s714_s13, 4  ;;  %s1208_s29 = scalar_lea.hbm %s1816_s2, 8  ;;  %s1203_s15 = int_to_ptr.hbm [resolvable:$true] %s1202_s15 }
  0x6f   : > { %v644_v17 = vsel %vm643_vm10, %v520_v9, %v642_v38  ;;  %v575_v1 = vrot.slane %v574_v10, 2  ;;  %v588_v13 = vadd.f32 %v587_v36, %v586_v30  ;;  %v600_v49 = vmul.f32 %v1544_v35, %v1544_v35  ;;  %s1204_s16 = scalar_lea.hbm %s1203_s15, 4  ;;  %p1209_p3 = scmp.lt.s32.totalorder %s1203_s15, %s1816_s2 }
  0x70   : > { %v646_v48 = vsel %vm645_vm11, %v527_v34, %v644_v17  ;;  %v582_v51 = vrot.slane %v581_v46, 2  ;;  %v595_v12 = vadd.f32 %v594_v44, %v593_v60  ;;  %v601_v52 = vmul.f32 %v1552_v41, %v1552_v41  ;;  %p1205_p0 = scmp.ne.s32.totalorder %s1203_s15, %s1204_s16  ;;  %p1210_p4 = scmp.lt.s32.totalorder %s1208_s29, %s1204_s16 }
  0x71   : > { %v648_v57 = vadd.f32 %v646_v48, %v636_v16  ;;  %v576_v18 = vadd.f32 %v575_v1, %v574_v10  ;;  %v589_v19 = vrot.slane %v588_v13, 2  ;;  %v602_v59 = vmul.f32 %v1554_v42, %v1554_v42 }
  0x72   : > { %v583_v62 = vadd.f32 %v582_v51, %v581_v46  ;;  %v596_v63 = vrot.slane %v595_v12, 2  ;;  %v603_v35 = vmul.f32 %v1556_v43, %v1556_v43  ;;  %v604_v7 = vmul.f32 %v600_v49, %v1562_v53  ;;  %p1206_p1 = pnand %p1205_p0, %p1429_p9  ;;  %p1211_p5 = por %p1210_p4, %p1209_p3 }
  0x73   : > { %649 = vst [vmem:[%s1487_s25] sm:$0xf] %v648_v57  ;;  %v577_v41 = vrot.slane %v576_v18, 1  ;;  %v590_v2 = vadd.f32 %v589_v19, %v588_v13  ;;  %v605_v14 = vmul.f32 %v601_v52, %v1564_v54  ;;  %v606_v56 = vmul.f32 %v602_v59, %v1566_v58 }
  0x74   : > { %v584_v42 = vrot.slane %v583_v62, 1  ;;  %v597_v21 = vadd.f32 %v596_v63, %v595_v12  ;;  %v607_v20 = vmul.f32 %v603_v35, %v1574_v8  ;;  %v608_v45 = vsel %vm499_vm6, %v604_v7, 0.0  ;;  %p1207_p2 = pneg %p1206_p1 }
  0x76   : > { %p1212_p6 = pnand %p1211_p5, %p1207_p2 }
  0x78   : > { %1215 = shalt.err (!%p1212_p6)
}
  0x79   : > { %994 = dma.vmem_to_hbm [thread:$0]  (%p1429_p9), %s1718_s12, 64, %s714_s13, %s684_s14   ;;  %v578_v43 = vadd.f32 %v577_v41, %v576_v18  ;;  %v591_v53 = vrot.slane %v590_v2, 1  ;;  %v609_v54 = vrot.slane %v608_v45, 4  ;;  %v615_v58 = vsel %vm499_vm6, %v605_v14, 0.0  ;;  %v661_v50 = vld [vmem:[%s1490_s26] sm:$0xf] }
  0x7a   : > { %s737_s24 = scalar_lea.hbm %s1818_s4, %s1647_s30  ;;  %v585_v8 = vadd.f32 %v584_v42, %v583_v62  ;;  %v598_v3 = vrot.slane %v597_v21, 1  ;;  %v616_v23 = vrot.slane %v615_v58, 4  ;;  %v622_v22 = vsel %vm499_vm6, %v606_v56, 0.0  ;;  %s739_s27 = sshll.u32 %s1490_s26, 4  ;;  %s740_s27 = int_to_ptr.vmem [resolvable:$true] %s739_s27 }
  0x7b   : > { %v592_v24 = vadd.f32 %v591_v53, %v590_v2  ;;  %v610_v4 = vadd.f32 %v609_v54, %v608_v45  ;;  %v623_v40 = vrot.slane %v622_v22, 4  ;;  %v629_v26 = vsel %vm499_vm6, %v607_v20, 0.0  ;;  %s1751_s21 = sshll.u32 %s737_s24, 4  ;;  %s1236_s16 = scalar_lea.hbm %s1818_s4, 8  ;;  %s742_s21 = int_to_ptr.hbm [resolvable:$true] %s1751_s21 }
  0x7c   : > { %v599_v5 = vadd.f32 %v598_v3, %v597_v21  ;;  %v666_v25 = vsel %vm641_vm9, %v585_v8, %v578_v43  ;;  %v617_v33 = vadd.f32 %v616_v23, %v615_v58  ;;  %v630_v6 = vrot.slane %v629_v26, 4  ;;  %s1230_s12 = sshra.s32 %s742_s21, 4  ;;  %s1231_s12 = int_to_ptr.hbm [resolvable:$true] %s1230_s12 }
  0x7d   : > { %v667_v28 = vsel %vm643_vm10, %v592_v24, %v666_v25  ;;  %v611_v61 = vrot.slane %v610_v4, 2  ;;  %v624_v47 = vadd.f32 %v623_v40, %v622_v22  ;;  %s1232_s13 = scalar_lea.hbm %s1231_s12, 4  ;;  %p1237_p13 = scmp.lt.s32.totalorder %s1231_s12, %s1818_s4 }
  0x7e   : > { %v668_v29 = vsel %vm645_vm11, %v599_v5, %v667_v28  ;;  %v618_v0 = vrot.slane %v617_v33, 2  ;;  %v631_v55 = vadd.f32 %v630_v6, %v629_v26  ;;  %p1233_p7 = scmp.ne.s32.totalorder %s1231_s12, %s1232_s13  ;;  %p1238_p0 = scmp.lt.s32.totalorder %s1236_s16, %s1232_s13 }
  0x7f   : > { %v670_v32 = vadd.f32 %v668_v29, %v661_v50  ;;  %v612_v31 = vadd.f32 %v611_v61, %v610_v4  ;;  %v625_v11 = vrot.slane %v624_v47, 2 }
  0x80   : > { %v619_v27 = vadd.f32 %v618_v0, %v617_v33  ;;  %v632_v37 = vrot.slane %v631_v55, 2  ;;  %p1234_p8 = pnand %p1233_p7, %p1429_p9  ;;  %p1239_p1 = por %p1238_p0, %p1237_p13 }
  0x81   : > { %671 = vst [vmem:[%s1490_s26] sm:$0xf] %v670_v32  ;;  %v613_v39 = vrot.slane %v612_v31, 1  ;;  %v626_v15 = vadd.f32 %v625_v11, %v624_v47 }
  0x82   : > { %v620_v30 = vrot.slane %v619_v27, 1  ;;  %v633_v9 = vadd.f32 %v632_v37, %v631_v55  ;;  %p1235_p10 = pneg %p1234_p8 }
  0x84   : > { %p1240_p2 = pnand %p1239_p1, %p1235_p10 }
  0x86   : > { %1243 = shalt.err (!%p1240_p2)
}
  0x87   : > { %996 = dma.vmem_to_hbm [thread:$0]  (%p1429_p9), %s740_s27, 64, %s742_s21, %s1684_s28   ;;  %v614_v10 = vadd.f32 %v613_v39, %v612_v31  ;;  %v627_v36 = vrot.slane %v626_v15, 1  ;;  %v621_v60 = vadd.f32 %v620_v30, %v619_v27  ;;  %v634_v34 = vrot.slane %v633_v9, 1  ;;  %v672_v46 = vld [vmem:[%s1493_s11] sm:$0xf] }
  0x88   : > { %s751_s9 = scalar_lea.hbm %s1819_s5, %s1647_s30  ;;  %s753_s10 = sshll.u32 %s1493_s11, 4  ;;  %s754_s10 = int_to_ptr.vmem [resolvable:$true] %s753_s10 }
  0x89   : > { %v628_v16 = vadd.f32 %v627_v36, %v626_v15  ;;  %v635_v38 = vadd.f32 %v634_v34, %v633_v9  ;;  %v677_v44 = vsel %vm641_vm9, %v621_v60, %v614_v10  ;;  %s755_s0 = sshll.u32 %s751_s9, 4  ;;  %s699_s28 = scalar_lea.sflag [#allocation12], %s1470_s7  ;;  %s756_s0 = int_to_ptr.hbm [resolvable:$true] %s755_s0 }
  0x8a   : > { %s1258_s30 = sshra.s32 %s756_s0, 4  ;;  %s1264_s21 = scalar_lea.hbm %s1819_s5, 8  ;;  %s1259_s30 = int_to_ptr.hbm [resolvable:$true] %s1258_s30 }
  0x8b   : > { %v678_v17 = vsel %vm643_vm10, %v628_v16, %v677_v44  ;;  %s1260_s22 = scalar_lea.hbm %s1259_s30, 4  ;;  %p1265_p6 = scmp.lt.s32.totalorder %s1259_s30, %s1819_s5 }
  0x8c   : > { %v679_v1 = vsel %vm645_vm11, %v635_v38, %v678_v17  ;;  %p1261_p3 = scmp.ne.s32.totalorder %s1259_s30, %s1260_s22  ;;  %p1266_p7 = scmp.lt.s32.totalorder %s1264_s21, %s1260_s22 }
  0x8d   : > { %v681_v13 = vadd.f32 %v679_v1, %v672_v46 }
  0x8e   : > { %p1262_p4 = pnand %p1261_p3, %p1429_p9  ;;  %p1267_p8 = por %p1266_p7, %p1265_p6 }
  0x8f   : > { %682 = vst [vmem:[%s1493_s11] sm:$0xf] %v681_v13 }
  0x90   : > { %p1263_p5 = pneg %p1262_p4 }
  0x92   : > { %p1268_p10 = pnand %p1267_p8, %p1263_p5 }
  0x94   : > { %1271 = shalt.err (!%p1268_p10)
}
  0x95   : > { %997 = dma.vmem_to_hbm [thread:$0]  (%p1429_p9), %s754_s10, 64, %s756_s0, %s699_s28  }
  0x96 PF: > { %s767_s7 = sand.u32 1, %s1318_s18   ;;  %p1010_p13 = pnand %p960_p12, %p1438_p11 }
  0x97   : > { %s768_s11 = scalar_lea.sflag [#allocation4], %s767_s7 }
  0x98   : > { %p1011_p0 = pneg %p1010_p13 }
  0x9a   : > { %1305 = dma.done.wait (%p1011_p0), %s768_s11, 64  }
  0x9b   : > { %1307 = vsyncadd (%p1011_p0), %s768_s11, 4294967232  ;;  %s1839_s14 = sadd.s32 4294967294, %s1338_s23  }
  0x9c   : > { %s777_s15 = sand.u32 1, %s1839_s14  }
  0x9d   : > { %s778_s16 = scalar_lea.sflag [#allocation9], %s777_s15 }
  0x9e   : > { %1309 = dma.done.wait (%p1011_p0), %s778_s16, 128  }
  0x9f   : > { %1311 = vsyncadd (%p1011_p0), %s778_s16, 4294967168  ;;  %s798_s6 = scalar_lea.sflag [#allocation12], %s767_s7 }
  0xa0   : > { %1313 = dma.done.wait (%p1011_p0), %s798_s6, 64  }
  0xa1   : > { %1315 = vsyncadd (%p1011_p0), %s798_s6, 4294967232  ;;  %s31_s23 = sadd.s32 1, %s1338_s23   ;;  %s1840_s8 = sld [smem:[#allocation20_spill]] }
  0xa2   : > { %p28_p9 = scmp.ge.s32.totalorder %s31_s23, 4   ;;  %s1841_s21 = sld [smem:[#allocation18_spill]] }
  0xa3   : > { %s1842_s22 = sld [smem:[#allocation19_spill]]  ;;  %s1843_s18 = smov %s1322_s19 }
  0xa4   : > { %s1844_s19 = smov %s1326_s20  ;;  %30 = sbr.rel (!%p28_p9) target bundleno = 14 (0xe), region = 139 }
  0xa7   : > { %s1845_s20 = smov %s1840_s8 }
  0xa9   :  { %804 = vsyncpa [#allocation3], 1 }
  0xaa   :  { %806 = vsyncpa [#allocation3 + $0x1], 1 }
  0xab   :  { %807 = vsyncpa [#allocation6], 1 }
  0xac   :  { %809 = vsyncpa [#allocation6 + $0x1], 1 }
  0xad   :  { %810 = vsyncpa [#allocation4], 1 }
  0xae   :  { %812 = vsyncpa [#allocation4 + $0x1], 1 }
  0xaf   :  { %813 = vsyncpa [#allocation9], 1 }
  0xb0   :  { %815 = vsyncpa [#allocation9 + $0x1], 1 }
  0xb1   :  { %816 = vsyncpa [#allocation12], 1 }
  0xb2   :  { %818 = vsyncpa [#allocation12 + $0x1], 1 }

</bundles_post_ra>
